<compile_context>
chip_gen: v7x
topology: tpu7x:2x2x1
jax: 0.10.0
libtpu: 0.0.40
codegen_flags: <defaults>
</compile_context>

<pallas_src>
import jax
import jax.numpy as jnp
from jax.experimental import pallas as pl
from jax.experimental.pallas import tpu as pltpu

NEG_SLOPE = 0.01  # F.leaky_relu default

# ---- packed-slab layout (rows x 128 lanes, f32) ----
#   rows   0..7   : W1 block  [8,128]   rows 0..5 = W1 (6x40), row 6 = b1,
#                                        col 40 gets the "1" passthrough
#   rows   8..135 : W2 block  [128,128] rows 0..39 = W2 (40x80), row 40 = b2,
#                                        col 80 gets the "1" passthrough
#   rows 136..263 : W3 block  [128,128] rows 0..79 = W3 (80x39), row 80 = b3
_W1_OFF, _W2_OFF, _W3_OFF, _SLAB_ROWS = 0, 8, 136, 264
_LANES = 128


def _round_up(n, m):
    return ((n + m - 1) // m) * m


def _leaky_relu(x):
    # max(x, 0.01*x) == leaky_relu(x) for slope in (0, 1); 2 VALU ops.
    return jnp.maximum(x, NEG_SLOPE * x)


def kie_kernel(x_ref, w_ref, o_ref):
    x = x_ref[...]                                   # [TM, 8]  (col 6 == 1.0)
    w1 = w_ref[_W1_OFF:_W1_OFF + 8, :]               # [8, 128]
    w2 = w_ref[_W2_OFF:_W2_OFF + 128, :]             # [128, 128]
    w3 = w_ref[_W3_OFF:_W3_OFF + 128, :]             # [128, 128]

    h1 = jnp.dot(x, w1, preferred_element_type=jnp.float32)    # bias folded in
    h1 = _leaky_relu(h1)                                        # col 40 stays 1
    h2 = jnp.dot(h1, w2, preferred_element_type=jnp.float32)
    h2 = _leaky_relu(h2)                                        # col 80 stays 1
    h3 = jnp.dot(h2, w3, preferred_element_type=jnp.float32)

    o_ref[...] = h3[:, :39].astype(o_ref.dtype)


def pack_params(params):
    """Pack (w1,b1,w2,b2,w3,b3) -- weights stored [in,out] -- into one slab."""
    w1, b1, w2, b2, w3, b3 = params
    slab = jnp.zeros((_SLAB_ROWS, _LANES), jnp.float32)
    # fc1 block
    slab = slab.at[_W1_OFF:_W1_OFF + 6, 0:40].set(w1)
    slab = slab.at[_W1_OFF + 6, 0:40].set(b1.reshape(-1))
    slab = slab.at[_W1_OFF + 6, 40].set(1.0)          # ones passthrough -> h1[:,40]
    # fc2 block
    slab = slab.at[_W2_OFF:_W2_OFF + 40, 0:80].set(w2)
    slab = slab.at[_W2_OFF + 40, 0:80].set(b2.reshape(-1))
    slab = slab.at[_W2_OFF + 40, 80].set(1.0)         # ones passthrough -> h2[:,80]
    # fc3 block
    slab = slab.at[_W3_OFF:_W3_OFF + 80, 0:39].set(w3)
    slab = slab.at[_W3_OFF + 80, 0:39].set(b3.reshape(-1))
    return slab


def _prepare_x(x, b_pad):
    """Pad batch to b_pad rows and features to 8 cols; col 6 = 1 (bias fold)."""
    b = x.shape[0]
    x_aug = jnp.zeros((b_pad, 8), jnp.float32)
    x_aug = x_aug.at[:b, :6].set(x.astype(jnp.float32))
    x_aug = x_aug.at[:, 6].set(1.0)
    return x_aug


def kie_forward(x, params, block_rows=1024):
    """x: [B, 6] float32 -> [B, 39] float32."""
    B = x.shape[0]
    slab = pack_params(params)

    # Tile the batch; TM >= 512 recommended for large B (double-buffered
    # pipelining), but never bigger than the (8-aligned) batch itself.
    TM = min(block_rows, _round_up(B, 8))
    B_pad = _round_up(B, TM)
    x_aug = _prepare_x(x, B_pad)

    out = pl.pallas_call(
        kie_kernel,
        out_shape=jax.ShapeDtypeStruct((B_pad, 39), jnp.float32),
        grid=(B_pad // TM,),
        in_specs=[
            pl.BlockSpec((TM, 8), lambda i: (i, 0)),              # x tiles stream
            pl.BlockSpec((_SLAB_ROWS, _LANES), lambda i: (0, 0)), # weights resident
        ],
        out_specs=pl.BlockSpec((TM, 39), lambda i: (i, 0)),
        compiler_params=pltpu.CompilerParams(
            dimension_semantics=("parallel",),        # v7x: shard tiles over 2 TCs
            vmem_limit_bytes=32 * 1024 * 1024,        # explicit; fits v5e/v6e/v7x
        ),
    )(x_aug, slab)
    return out[:B]


def init_params(key):
    """Deterministic init mirroring nn.Linear shapes (stored as [in, out])."""
    def linear_init(k, fan_in, fan_out):
        kw, kb = jax.random.split(k)
        bound = 1.0 / jnp.sqrt(fan_in)  # PyTorch default uniform bound
        w = jax.random.uniform(kw, (fan_in, fan_out), jnp.float32, -bound, bound)
        b = jax.random.uniform(kb, (1, fan_out), jnp.float32, -bound, bound)
        return w, b

    k1, k2, k3 = jax.random.split(key, 3)
    w1, b1 = linear_init(k1, 6, 40)
    w2, b2 = linear_init(k2, 40, 80)
    w3, b3 = linear_init(k3, 80, 39)
    return (w1, b1, w2, b2, w3, b3)


def reference_forward(x, params):
    """Pure-JAX reference for correctness checking."""
    w1, b1, w2, b2, w3, b3 = params
    h1 = x @ w1 + b1
    h1 = jnp.where(h1 >= 0, h1, NEG_SLOPE * h1)
    h2 = h1 @ w2 + b2
    h2 = jnp.where(h2 >= 0, h2, NEG_SLOPE * h2)
    return h2 @ w3 + b3


if __name__ == "__main__":
    key = jax.random.PRNGKey(0)
    k_x, k_x2, k_p = jax.random.split(key, 3)
    params = init_params(k_p)

    # Small toy case (single grid step, TM = 8).
    B = 8
    x = jax.random.normal(k_x, (B, 6), dtype=jnp.float32)
    out = jax.block_until_ready(kie_forward(x, params))
    ref = reference_forward(x, params)
    assert out.shape == (B, 39), out.shape
    assert jnp.allclose(out, ref, atol=1e-5, rtol=1e-5), "mismatch (B=8)"

    # Exercise the batch grid + tail padding (B not a multiple of the tile).
    B2 = 200
    x2 = jax.random.normal(k_x2, (B2, 6), dtype=jnp.float32)
    out2 = jax.block_until_ready(kie_forward(x2, params, block_rows=64))
    ref2 = reference_forward(x2, params)
    assert out2.shape == (B2, 39), out2.shape
    assert jnp.allclose(out2, ref2, atol=1e-5, rtol=1e-5), "mismatch (B=200)"

    print("KERNEL_OK")
</pallas_src>

<mosaic_0001>
module attributes {stable_mosaic.version = 11 : i64} {
  func.func @kie_kernel(%arg0: i32, %arg1: memref<8x8xf32, #tpu.memory_space<vmem>>, %arg2: memref<264x128xf32, #tpu.memory_space<vmem>>, %arg3: memref<8x39xf32, #tpu.memory_space<vmem>>) attributes {dimension_semantics = [#tpu.dimension_semantics<parallel>], iteration_bounds = array<i64: 1>, scalar_prefetch = 0 : i64, scratch_operands = 0 : i64, tpu.core_type = #tpu.core_type<tc>, window_params = [{transform_indices = @transform_0, window_bounds = array<i64: 8, 8>}, {pipeline_mode = #tpu.pipeline_mode<synchronous>, transform_indices = @transform_1, window_bounds = array<i64: 264, 128>}, {transform_indices = @transform_2, window_bounds = array<i64: 8, 39>}]} {
    %c0 = arith.constant 0 : index
    %c0_0 = arith.constant 0 : index
    %0 = vector.load %arg1[%c0, %c0_0] : memref<8x8xf32, #tpu.memory_space<vmem>>, vector<8x8xf32>
    %c0_1 = arith.constant 0 : index
    %c0_2 = arith.constant 0 : index
    %1 = vector.load %arg2[%c0_1, %c0_2] : memref<264x128xf32, #tpu.memory_space<vmem>>, vector<8x128xf32>
    %c8 = arith.constant 8 : index
    %c0_3 = arith.constant 0 : index
    %2 = vector.load %arg2[%c8, %c0_3] : memref<264x128xf32, #tpu.memory_space<vmem>>, vector<128x128xf32>
    %c136 = arith.constant 136 : index
    %c0_4 = arith.constant 0 : index
    %3 = vector.load %arg2[%c136, %c0_4] : memref<264x128xf32, #tpu.memory_space<vmem>>, vector<128x128xf32>
    %cst = arith.constant dense<0.000000e+00> : vector<8x128xf32>
    %4 = tpu.matmul %0, %1, %cst {dimension_numbers = #tpu.dot_dimension_numbers<[1], [0], [0], [1], [0, 0, 1, 1], [], []>} : vector<8x8xf32>, vector<8x128xf32>, vector<8x128xf32> -> vector<8x128xf32>
    %cst_5 = arith.constant 0.00999999977 : f32
    %5 = vector.broadcast %cst_5 : f32 to vector<8x128xf32>
    %6 = arith.mulf %5, %4 : vector<8x128xf32>
    %7 = arith.maximumf %4, %6 : vector<8x128xf32>
    %cst_6 = arith.constant dense<0.000000e+00> : vector<8x128xf32>
    %8 = tpu.matmul %7, %2, %cst_6 {dimension_numbers = #tpu.dot_dimension_numbers<[1], [0], [0], [1], [0, 0, 1, 1], [], []>} : vector<8x128xf32>, vector<128x128xf32>, vector<8x128xf32> -> vector<8x128xf32>
    %cst_7 = arith.constant 0.00999999977 : f32
    %9 = vector.broadcast %cst_7 : f32 to vector<8x128xf32>
    %10 = arith.mulf %9, %8 : vector<8x128xf32>
    %11 = arith.maximumf %8, %10 : vector<8x128xf32>
    %cst_8 = arith.constant dense<0.000000e+00> : vector<8x128xf32>
    %12 = tpu.matmul %11, %3, %cst_8 {dimension_numbers = #tpu.dot_dimension_numbers<[1], [0], [0], [1], [0, 0, 1, 1], [], []>} : vector<8x128xf32>, vector<128x128xf32>, vector<8x128xf32> -> vector<8x128xf32>
    %13 = vector.extract_strided_slice %12 {offsets = [0, 0], sizes = [8, 39], strides = [1, 1]} : vector<8x128xf32> to vector<8x39xf32>
    %c0_9 = arith.constant 0 : index
    %c0_10 = arith.constant 0 : index
    %14 = vector.load %arg3[%c0_9, %c0_10] : memref<8x39xf32, #tpu.memory_space<vmem>>, vector<8x39xf32>
    tpu.vector_store %arg3[%c0_9, %c0_10], %13 {strides = array<i32>} : memref<8x39xf32, #tpu.memory_space<vmem>>, vector<8x39xf32>,
    return
  }
  func.func @transform_0(%arg0: i32) -> (i32, i32) {
    %c0_i32 = arith.constant 0 : i32
    %c0_i32_0 = arith.constant 0 : i32
    return %arg0, %c0_i32 : i32, i32
  }
  func.func @transform_1(%arg0: i32) -> (i32, i32) {
    %c0_i32 = arith.constant 0 : i32
    %c0_i32_0 = arith.constant 0 : i32
    %c0_i32_1 = arith.constant 0 : i32
    return %c0_i32, %c0_i32_0 : i32, i32
  }
  func.func @transform_2(%arg0: i32) -> (i32, i32) {
    %c0_i32 = arith.constant 0 : i32
    %c0_i32_0 = arith.constant 0 : i32
    return %arg0, %c0_i32 : i32, i32
  }
}

</mosaic_0001>

<bundles_post_ra>
// kernel: tpu_custom_call.1
= control target key start
LH: loop header
LB: loop body
LE: loop exit
PB: predicated region body
PF: predicated region fallthrough
CT: control target
= control target key end

     0   :  { %7 = vsyncpa [#allocation3], 0  ;;  %s633_s0 = inlined_call_operand.hbm [shape: f32[8,8], index: 0, kind: input, shape index: {}]   ;;  %s634_s1 = inlined_call_operand.hbm [shape: f32[264,128], index: 1, kind: input, shape index: {}]   ;;  %s635_s2 = inlined_call_operand.hbm [shape: f32[8,39], index: 2, kind: output, shape index: {}]  }
   0x1   :  { %8 = vsyncpa [#allocation6], 0 }
   0x2   :  { %9 = vsyncpa [#allocation4], 0  ;;  %s548_s9 = smov [#allocation2]   ;;  %s549_s11 = smov [#allocation5]  }
   0x3   :  { %s16_s10 = sshll.u32 %s548_s9, 4  ;;  %s25_s12 = sshll.u32 %s549_s11, 4  ;;  %s17_s10 = int_to_ptr.vmem [resolvable:$true] %s16_s10  ;;  %s571_s12 = int_to_ptr.vmem [resolvable:$true] %s25_s12 }
   0x4   :  { %s476_s15 = scalar_lea.hbm %s633_s0, 128 }
   0x5   :  { %p477_p0 = scmp.ne.s32.totalorder %s633_s0, %s476_s15  ;;  %p480_p1 = scmp.lt.u32.totalorder %s476_s15, %s633_s0 }
   0x7   :  { %p482_p2 = pnand %p480_p1, %p477_p0 }
   0x9   :  { %485 = shalt.err (!%p482_p2)
}
   0xa   :  { %s486_s20 = scalar_lea.vmem %s17_s10, 128  ;;  %p491_p4 = scmp.lt.s32.totalorder %s17_s10, %s17_s10 }
   0xb   :  { %p487_p3 = scmp.ne.s32.totalorder %s17_s10, %s486_s20  ;;  %p492_p5 = scmp.lt.s32.totalorder %s486_s20, %s486_s20 }
   0xd   :  { %p493_p6 = por %p492_p5, %p491_p4 }
   0xf   :  { %p494_p7 = pnand %p493_p6, %p487_p3 }
  0x11   :  { %497 = shalt.err (!%p494_p7)
}
  0x12   :  { %19 = dma.hbm_to_vmem [thread:$0]  %s633_s0, 128, %s17_s10, [#allocation3]  }
  0x13   :  { %s498_s25 = scalar_lea.hbm %s634_s1, 4224 }
  0x14   :  { %p499_p8 = scmp.ne.s32.totalorder %s634_s1, %s498_s25  ;;  %p502_p9 = scmp.lt.u32.totalorder %s498_s25, %s634_s1 }
  0x16   :  { %p504_p10 = pnand %p502_p9, %p499_p8 }
  0x18   :  { %507 = shalt.err (!%p504_p10)
}
  0x19   :  { %s508_s30 = scalar_lea.vmem %s571_s12, 4224  ;;  %p513_p12 = scmp.lt.s32.totalorder %s571_s12, %s571_s12 }
  0x1a   :  { %p509_p11 = scmp.ne.s32.totalorder %s571_s12, %s508_s30  ;;  %p514_p13 = scmp.lt.s32.totalorder %s508_s30, %s508_s30 }
  0x1c   :  { %p515_p0 = por %p514_p13, %p513_p12 }
  0x1e   :  { %p516_p1 = pnand %p515_p0, %p509_p11 }
  0x20   :  { %519 = shalt.err (!%p516_p1)
}
  0x21   :  { %s550_s0 = smov 128   ;;  %s551_s3 = smov 8  }
  0x22   :  { %31 = dma.hbm_to_vmem [thread:$0]  %s634_s1, 4224, %s571_s12, [#allocation6], %s550_s0, %s550_s0, %s551_s3  }
  0x23   :  { %542 = dma.done.wait [#allocation3], 128  }
  0x24   :  { %543 = vsyncadd [#allocation3], 4294967168 }
  0x25   :  { %544 = dma.done.wait [#allocation6], 4224  }
  0x26   :  { %545 = vsyncadd [#allocation6], 4294963072  ;;  %v552_v0 = vmov 0.0   ;;  %vm553_vm0 = vmmov 0   ;;  %v554_v1 = vmov 0.0|0.0   ;;  %vm72_vm1 = vcmask 64512  }
  0x27   :  { %345 = vmatprep.subr.mxu0 %v552_v0  ;;  %347 = vmatprep.mubr.msk.f32.mxu0 %vm553_vm0, %v552_v0  ;;  %v39_v2 = vld [vmem:[#allocation5] sm:$0xff]  ;;  %v38_v3 = vld [vmem:[#allocation2] sm:$0xff]  ;;  %v40_v4 = vld [vmem:[#allocation5 + $0x8] sm:$0xff]  ;;  %s555_s1 = smov [#allocation7]   ;;  %vm290_vm2 = vcmask 318464  }
  0x28   :  { %420 = vmatprep.subr.bf16.mxu1 %v554_v1  ;;  %382 = vmatprep.mubr.msk.f32.mxu1 %vm553_vm0, %v552_v0  ;;  %v41_v5 = vld [vmem:[#allocation5 + $0x10] sm:$0xff]  ;;  %v42_v6 = vld [vmem:[#allocation5 + $0x18] sm:$0xff]  ;;  %v43_v7 = vld [vmem:[#allocation5 + $0x20] sm:$0xff]  ;;  %s298_s6 = sshll.u32 %s555_s1, 4  ;;  %s299_s6 = int_to_ptr.vmem [resolvable:$true] %s298_s6 }
  0x29   :  { %346 = vmatpush3.msra.mxu0 %v39_v2  ;;  %v421_v8 = vpack.c.bf16 %v41_v5, %v40_v4  ;;  %v424_v9 = vpack.c.bf16 %v43_v7, %v42_v6  ;;  %v44_v10 = vld [vmem:[#allocation5 + $0x28] sm:$0xff]  ;;  %v45_v11 = vld [vmem:[#allocation5 + $0x30] sm:$0xff]  ;;  %v46_v13 = vld [vmem:[#allocation5 + $0x38] sm:$0xff]  ;;  %s520_s7 = scalar_lea.vmem %s299_s6, 128  ;;  %p525_p3 = scmp.lt.s32.totalorder %s299_s6, %s299_s6 }
  0x2a   :  { %348 = vmatmul.mubr.msk.f32.vlgmr.msra.gmra.mrb[0].mxu0 %vm72_vm1, %v38_v3  ;;  %444 = vmatprep.subr.bf16.mxu0 %v554_v1  ;;  %v427_v12 = vpack.c.bf16 %v45_v11, %v44_v10  ;;  %v47_v14 = vld [vmem:[#allocation5 + $0x40] sm:$0xff]  ;;  %v48_v16 = vld [vmem:[#allocation5 + $0x48] sm:$0xff]  ;;  %v49_v17 = vld [vmem:[#allocation5 + $0x50] sm:$0xff]  ;;  %p521_p2 = scmp.ne.s32.totalorder %s299_s6, %s520_s7  ;;  %p526_p4 = scmp.lt.s32.totalorder %s520_s7, %s520_s7 }
  0x2b   :  { %417 = vmatprep.mubr.msk.f32.mxu0 %vm553_vm0, %v552_v0  ;;  %422 = vmatpush3.bf16.msra.mxu1 %v421_v8  ;;  %v430_v15 = vpack.c.bf16 %v47_v14, %v46_v13  ;;  %v433_v18 = vpack.c.bf16 %v49_v17, %v48_v16  ;;  %v50_v19 = vld [vmem:[#allocation5 + $0x58] sm:$0xff]  ;;  %v51_v20 = vld [vmem:[#allocation5 + $0x60] sm:$0xff]  ;;  %v52_v22 = vld [vmem:[#allocation5 + $0x68] sm:$0xff] }
  0x2c   :  { %423 = vmatprep.subr.bf16.mxu1 %v554_v1  ;;  %v436_v21 = vpack.c.bf16 %v51_v20, %v50_v19  ;;  %v53_v23 = vld [vmem:[#allocation5 + $0x70] sm:$0xff]  ;;  %v54_v25 = vld [vmem:[#allocation5 + $0x78] sm:$0xff]  ;;  %v55_v26 = vld [vmem:[#allocation5 + $0x80] sm:$0xff]  ;;  %p527_p5 = por %p526_p4, %p525_p3 }
  0x2d   :  { %v439_v24 = vpack.c.bf16 %v53_v23, %v52_v22  ;;  %v442_v27 = vpack.c.bf16 %v55_v26, %v54_v25  ;;  %v56_v28 = vld [vmem:[#allocation5 + $0x88] sm:$0xff]  ;;  %v57_v29 = vld [vmem:[#allocation5 + $0x90] sm:$0xff]  ;;  %v58_v30 = vld [vmem:[#allocation5 + $0x98] sm:$0xff] }
  0x2e   :  { %v445_v31 = vpack.c.bf16 %v57_v29, %v56_v28  ;;  %v59_v32 = vld [vmem:[#allocation5 + $0xa0] sm:$0xff]  ;;  %v60_v34 = vld [vmem:[#allocation5 + $0xa8] sm:$0xff]  ;;  %v61_v35 = vld [vmem:[#allocation5 + $0xb0] sm:$0xff]  ;;  %p528_p6 = pnand %p527_p5, %p521_p2 }
  0x2f   :  { %425 = vmatpush3.bf16.msra.mxu1 %v424_v9  ;;  %v448_v33 = vpack.c.bf16 %v59_v32, %v58_v30  ;;  %v451_v36 = vpack.c.bf16 %v61_v35, %v60_v34  ;;  %v62_v37 = vld [vmem:[#allocation5 + $0xb8] sm:$0xff]  ;;  %v63_v38 = vld [vmem:[#allocation5 + $0xc0] sm:$0xff]  ;;  %v64_v40 = vld [vmem:[#allocation5 + $0xc8] sm:$0xff] }
  0x30   :  { %426 = vmatprep.subr.bf16.mxu1 %v554_v1  ;;  %446 = vmatpush3.bf16.msra.mxu0 %v445_v31  ;;  %v454_v39 = vpack.c.bf16 %v63_v38, %v62_v37  ;;  %v65_v41 = vld [vmem:[#allocation5 + $0xd0] sm:$0xff]  ;;  %v66_v43 = vld [vmem:[#allocation5 + $0xd8] sm:$0xff]  ;;  %v67_v44 = vld [vmem:[#allocation5 + $0xe0] sm:$0xff] }
  0x31   :  { %447 = vmatprep.subr.bf16.mxu0 %v554_v1  ;;  %v457_v42 = vpack.c.bf16 %v65_v41, %v64_v40  ;;  %v460_v45 = vpack.c.bf16 %v67_v44, %v66_v43  ;;  %v68_v46 = vld [vmem:[#allocation5 + $0xe8] sm:$0xff]  ;;  %v69_v47 = vld [vmem:[#allocation5 + $0xf0] sm:$0xff]  ;;  %v70_v53 = vld [vmem:[#allocation5 + $0xf8] sm:$0xff] }
  0x32   :  { %v463_v48 = vpack.c.bf16 %v69_v47, %v68_v46  ;;  %v71_v54 = vld [vmem:[#allocation5 + $0x100] sm:$0xff] }
  0x33   :  { %428 = vmatpush3.bf16.msra.mxu1 %v427_v12  ;;  %v466_v55 = vpack.c.bf16 %v71_v54, %v70_v53 }
  0x34   :  { %429 = vmatprep.subr.bf16.mxu1 %v554_v1  ;;  %449 = vmatpush3.bf16.msra.mxu0 %v448_v33 }
  0x35   :  { %450 = vmatprep.subr.bf16.mxu0 %v554_v1 }
  0x37   :  { %431 = vmatpush3.bf16.msra.mxu1 %v430_v15 }
  0x38   :  { %432 = vmatprep.subr.bf16.mxu1 %v554_v1  ;;  %452 = vmatpush3.bf16.msra.mxu0 %v451_v36 }
  0x39   :  { %453 = vmatprep.subr.bf16.mxu0 %v554_v1 }
  0x3b   :  { %434 = vmatpush3.bf16.msra.mxu1 %v433_v18 }
  0x3c   :  { %435 = vmatprep.subr.bf16.mxu1 %v554_v1  ;;  %455 = vmatpush3.bf16.msra.mxu0 %v454_v39 }
  0x3d   :  { %456 = vmatprep.subr.bf16.mxu0 %v554_v1 }
  0x3f   :  { %437 = vmatpush3.bf16.msra.mxu1 %v436_v21 }
  0x40   :  { %438 = vmatprep.subr.bf16.mxu1 %v554_v1  ;;  %458 = vmatpush3.bf16.msra.mxu0 %v457_v42 }
  0x41   :  { %459 = vmatprep.subr.bf16.mxu0 %v554_v1 }
  0x43   :  { %440 = vmatpush3.bf16.msra.mxu1 %v439_v24 }
  0x44   :  { %441 = vmatprep.subr.bf16.mxu1 %v554_v1  ;;  %461 = vmatpush3.bf16.msra.mxu0 %v460_v45 }
  0x45   :  { %462 = vmatprep.subr.bf16.mxu0 %v554_v1 }
  0x47   :  { %443 = vmatpush3.bf16.msra.mxu1 %v442_v27 }
  0x48   :  { %464 = vmatpush3.bf16.msra.mxu0 %v463_v48 }
  0x49   :  { %465 = vmatprep.subr.bf16.mxu0 %v554_v1 }
  0x4c   :  { %467 = vmatpush3.bf16.msra.mxu0 %v466_v55 }
  0xfd   :  { %v142_v49 = vpop.f32.mrb[0].mxu0 }
  0xfe   :  { %v146_v50 = vmul.f32 0.01, %v142_v49  ;;  %v349_v51 = vpop.f32.mrb[1].mxu0 }
 0x100   :  { %v147_v52 = vmax.f32 %v142_v49, %v146_v50 }
 0x102   :  { %383 = vmatmul.mubr.f32.vlgmr.msra.gmra.mrb[0].mxu1 %v147_v52 }
 0x1d5   :  { %v214_v56 = vpop.f32.mrb[0].mxu1 }
 0x1d6   :  { %v218_v57 = vmul.f32 0.01, %v214_v56  ;;  %v384_v58 = vpop.f32.mrb[1].mxu1 }
 0x1d8   :  { %v219_v59 = vmax.f32 %v214_v56, %v218_v57 }
 0x1da   :  { %418 = vmatmul.mubr.f32.vlgmr.msra.gmra.mrb[2].mxu0 %v219_v59 }
 0x2ad   :  { %v286_v60 = vpop.f32.mrb[2].mxu0 }
 0x2ae   :  { %v419_v61 = vpop.f32.mrb[3].mxu0  ;;  %291 = vst.msk [vmem:[#allocation7] sm:$0xff] %vm290_vm2, %v286_v60 }
 0x2af   :  { %531 = shalt.err (!%p528_p6)
}
 0x2b0   :  { %s532_s10 = scalar_lea.hbm %s635_s2, 128 }
 0x2b1   :  { %p533_p7 = scmp.ne.s32.totalorder %s635_s2, %s532_s10  ;;  %p536_p8 = scmp.lt.u32.totalorder %s532_s10, %s635_s2 }
 0x2b3   :  { %p538_p9 = pnand %p536_p8, %p533_p7 }
 0x2b5   :  { %541 = shalt.err (!%p538_p9)
}
 0x2b6   :  { %301 = dma.vmem_to_hbm [thread:$0]  %s299_s6, 128, %s635_s2, [#allocation4]  }
 0x2b7   :  { %546 = dma.done.wait [#allocation4], 128  }
 0x2b8   :  { %547 = vsyncadd [#allocation4], 4294967168 }
 0x2b9   :  { %305 = vsyncpa [#allocation3], 1 }
 0x2ba   :  { %306 = vsyncpa [#allocation6], 1 }
 0x2bb   :  { %307 = vsyncpa [#allocation4], 1 }

</bundles_post_ra>
